<compile_context>
chip_gen: v5e
topology: v5e:2x2
jax: 0.10.0
libtpu: 0.0.40
codegen_flags: <defaults>
</compile_context>

<pallas_src>
import functools

import jax
import jax.numpy as jnp
from jax import lax
from jax.experimental import pallas as pl
from jax.experimental.pallas import tpu as pltpu


def _round_up(x: int, m: int) -> int:
    return (x + m - 1) // m * m


def _pick_tile(dim: int, target: int, align: int):
    """Choose (tile, padded_dim) for one array dimension.

    - dim <= target: use the whole dim as the tile (a full-dim block is always
      legal), no padding at all.
    - otherwise prefer a tile that is a multiple of `align` and divides
      round_up(dim, align): at most `align - 1` elements of padding.
    - if the divisor choice collapses to a tiny tile (prime-ish block count),
      fall back to tile == target with at most `target - 1` elements of padding.
    """
    target = max(align, _round_up(target, align))
    if dim <= target:
        return dim, dim
    padded = _round_up(dim, align)
    nblk = padded // align
    best = 1
    for d in range(1, nblk + 1):
        if nblk % d == 0 and d * align <= target:
            best = d
    tile = best * align
    if tile * 2 < target:
        tile = target
        padded = _round_up(dim, tile)
    return tile, padded


def _linear_kernel_acc(x_ref, w_ref, b_ref, o_ref, acc_ref):
    # x_ref: (tm, tk), w_ref: (tn, tk) in native (N, K) layout, b_ref: (1, tn),
    # o_ref: (tm, tn), acc_ref: (tm, tn) f32 scratch. Used when out dtype != f32.
    k = pl.program_id(2)

    @pl.when(k == 0)
    def _init():
        acc_ref[...] = jnp.zeros_like(acc_ref)

    acc_ref[...] += lax.dot_general(
        x_ref[...], w_ref[...],
        dimension_numbers=(((1,), (1,)), ((), ())),   # contract last dims (no transpose)
        preferred_element_type=jnp.float32,
    )

    @pl.when(k == pl.num_programs(2) - 1)
    def _finalize():
        o_ref[...] = (acc_ref[...] + b_ref[...].astype(jnp.float32)).astype(o_ref.dtype)


def _linear_kernel_f32(x_ref, w_ref, b_ref, o_ref):
    # f32 output: accumulate directly into the resident output block (output
    # BlockSpec index is k-invariant), so no scratch accumulator is needed.
    k = pl.program_id(2)

    @pl.when(k == 0)
    def _init():
        o_ref[...] = jnp.broadcast_to(b_ref[...], o_ref.shape)

    o_ref[...] += lax.dot_general(
        x_ref[...], w_ref[...],
        dimension_numbers=(((1,), (1,)), ((), ())),
        preferred_element_type=jnp.float32,
    )


@functools.partial(jax.jit, static_argnames=("tm", "tn", "tk", "mxu_dtype"))
def linear(x, weight, bias, *, tm=512, tn=512, tk=1024, mxu_dtype=None):
    """y = x @ weight.T + bias   (PyTorch nn-style Linear forward).

    x:      (M, K)  = (batch, in_features)
    weight: (N, K)  = (out_features, in_features)  -- native layout, never transposed
    bias:   (N,)
    returns (M, N) in x.dtype
    """
    M, K = x.shape
    N, K2 = weight.shape
    assert K == K2, "in_features mismatch"
    out_dtype = x.dtype

    # Optional lower-precision MXU feed (keeps the f32 accumulate / f32 bias add).
    if mxu_dtype is not None:
        x = x.astype(mxu_dtype)
        weight = weight.astype(mxu_dtype)

    compute_dtype = jnp.promote_types(x.dtype, weight.dtype)
    x = x.astype(compute_dtype)
    weight = weight.astype(compute_dtype)
    in_bytes = compute_dtype.itemsize
    out_bytes = out_dtype.itemsize
    sub = 32 // in_bytes  # sublane alignment: f32 -> 8, bf16 -> 16, int8 -> 32

    # Decode-ish shapes (few rows): stream bigger weight tiles per grid step so
    # DMA time dominates the ~0.35 us per-step overhead.
    if M <= 128:
        tn = max(tn, 1024)
        tk = max(tk, 2048)

    tm_eff, Mp = _pick_tile(M, tm, sub)
    tn_eff, Np = _pick_tile(N, tn, 128)
    tk_eff, Kp = _pick_tile(K, tk, 128)

    # Pad only when actually required (zero-padding K is benign for the dot).
    if (Mp, Kp) != (M, K):
        x = jnp.pad(x, ((0, Mp - M), (0, Kp - K)))
    if (Np, Kp) != (N, K):
        weight = jnp.pad(weight, ((0, Np - N), (0, Kp - K)))
    bias2d = bias.reshape(1, N).astype(jnp.float32)
    if Np != N:
        bias2d = jnp.pad(bias2d, ((0, 0), (0, Np - N)))

    grid = (Mp // tm_eff, Np // tn_eff, Kp // tk_eff)

    use_scratch = out_dtype != jnp.float32
    kernel = _linear_kernel_acc if use_scratch else _linear_kernel_f32
    scratch = [pltpu.VMEM((tm_eff, tn_eff), jnp.float32)] if use_scratch else []

    # VMEM footprint: double-buffered x/w/out tiles (+ optional f32 scratch).
    vmem_needed = (
        2 * (tm_eff * tk_eff + tn_eff * tk_eff) * in_bytes
        + 2 * tm_eff * tn_eff * out_bytes
        + (tm_eff * tn_eff * 4 if use_scratch else 0)
        + 2 * tn_eff * 4
    )
    # Leave slack for internal scratch; cap at 64 MiB so it is safe on v7x.
    vmem_limit = min(64 * 1024 * 1024,
                     max(32 * 1024 * 1024, int(vmem_needed * 1.25) + (1 << 20)))

    cost = pl.CostEstimate(
        flops=2 * Mp * Np * Kp,
        transcendentals=0,
        bytes_accessed=(Mp * Kp * in_bytes + Np * Kp * in_bytes
                        + Np * 4 + Mp * Np * out_bytes),
    )

    out_p = pl.pallas_call(
        kernel,
        out_shape=jax.ShapeDtypeStruct((Mp, Np), out_dtype),
        grid=grid,
        in_specs=[
            pl.BlockSpec((tm_eff, tk_eff), lambda i, j, k: (i, k)),   # x tile
            pl.BlockSpec((tn_eff, tk_eff), lambda i, j, k: (j, k)),   # weight tile (native N,K)
            pl.BlockSpec((1, tn_eff), lambda i, j, k: (0, j)),        # bias row
        ],
        out_specs=pl.BlockSpec((tm_eff, tn_eff), lambda i, j, k: (i, j)),
        scratch_shapes=scratch,
        compiler_params=pltpu.CompilerParams(
            dimension_semantics=("parallel", "parallel", "arbitrary"),
            vmem_limit_bytes=vmem_limit,
        ),
        cost_estimate=cost,
    )(x, weight, bias2d)

    if (Mp, Np) != (M, N):
        out_p = out_p[:M, :N]
    return out_p


if __name__ == "__main__":
    # --- Small shapes consistent with the module's forward: x (batch, in_features).
    batch, in_features, out_features = 8, 32, 16

    key = jax.random.PRNGKey(0)
    kx, kw = jax.random.split(key)

    x = jax.random.normal(kx, (batch, in_features), dtype=jnp.float32)

    # Deterministic params mimicking kaiming_normal_(mode='fan_out', relu):
    # std = sqrt(2 / fan_out) = sqrt(2 / out_features); bias = zeros.
    std = (2.0 / out_features) ** 0.5
    weight = jax.random.normal(kw, (out_features, in_features), dtype=jnp.float32) * std
    bias = jnp.zeros((out_features,), dtype=jnp.float32)

    out = jax.block_until_ready(linear(x, weight, bias))
    ref = x @ weight.T + bias[None, :]
    assert out.shape == (batch, out_features)
    assert jnp.allclose(out, ref, atol=1e-5, rtol=1e-5), "mismatch vs reference (small)"

    # --- f32, ragged K (640) exercises full-dim blocks with zero padding.
    M2, K2_, N2 = 384, 640, 512
    kx2, kw2, kb2 = jax.random.split(jax.random.PRNGKey(1), 3)
    x2 = jax.random.normal(kx2, (M2, K2_), dtype=jnp.float32)
    w2 = jax.random.normal(kw2, (N2, K2_), dtype=jnp.float32) * (2.0 / N2) ** 0.5
    b2 = jax.random.normal(kb2, (N2,), dtype=jnp.float32)
    out2 = jax.block_until_ready(linear(x2, w2, b2))
    ref2 = jnp.dot(x2, w2.T, precision="highest") + b2[None, :]
    assert out2.shape == (M2, N2)
    assert jnp.allclose(out2, ref2, atol=2e-2, rtol=2e-2), "mismatch vs reference (f32)"

    # --- bf16 operands exercise the scratch-accumulator kernel path.
    x3 = x2.astype(jnp.bfloat16)
    w3 = w2.astype(jnp.bfloat16)
    b3 = b2.astype(jnp.bfloat16)
    out3 = jax.block_until_ready(linear(x3, w3, b3))
    ref3 = (jnp.dot(x3.astype(jnp.float32), w3.T.astype(jnp.float32), precision="highest")
            + b3.astype(jnp.float32)[None, :])
    assert out3.shape == (M2, N2)
    assert jnp.allclose(out3.astype(jnp.float32), ref3, atol=5e-2, rtol=5e-2), \
        "mismatch vs reference (bf16)"

    # --- Multi-tile grid with a real K-reduction loop (divisor-based tk, no pad).
    M4, K4, N4 = 1024, 2304, 1536
    kx4, kw4, kb4 = jax.random.split(jax.random.PRNGKey(2), 3)
    x4 = jax.random.normal(kx4, (M4, K4), dtype=jnp.float32)
    w4 = jax.random.normal(kw4, (N4, K4), dtype=jnp.float32) * (2.0 / N4) ** 0.5
    b4 = jax.random.normal(kb4, (N4,), dtype=jnp.float32)
    out4 = jax.block_until_ready(linear(x4, w4, b4))
    ref4 = jnp.dot(x4, w4.T, precision="highest") + b4[None, :]
    assert out4.shape == (M4, N4)
    assert jnp.allclose(out4, ref4, atol=5e-2, rtol=5e-2), "mismatch vs reference (tiled)"

    print("KERNEL_OK")
</pallas_src>

<mosaic_0001>
module attributes {stable_mosaic.version = 11 : i64} {
  func.func @_linear_kernel_f32(%arg0: i32, %arg1: i32, %arg2: i32, %arg3: memref<8x32xf32, #tpu.memory_space<vmem>>, %arg4: memref<16x32xf32, #tpu.memory_space<vmem>>, %arg5: memref<1x16xf32, #tpu.memory_space<vmem>>, %arg6: memref<8x16xf32, #tpu.memory_space<vmem>>) attributes {dimension_semantics = [#tpu.dimension_semantics<parallel>, #tpu.dimension_semantics<parallel>, #tpu.dimension_semantics<arbitrary>], iteration_bounds = array<i64: 1, 1, 1>, scalar_prefetch = 0 : i64, scratch_operands = 0 : i64, tpu.core_type = #tpu.core_type<tc>, window_params = [{transform_indices = @transform_0, window_bounds = array<i64: 8, 32>}, {transform_indices = @transform_1, window_bounds = array<i64: 16, 32>}, {transform_indices = @transform_2, window_bounds = array<i64: 1, 16>}, {transform_indices = @transform_3, window_bounds = array<i64: 8, 16>}]} {
    %c0_i32 = arith.constant 0 : i32
    %0 = arith.cmpi eq, %arg2, %c0_i32 : i32
    %1 = arith.extui %0 : i1 to i32
    %c0_i32_0 = arith.constant 0 : i32
    %2 = arith.cmpi ne, %1, %c0_i32_0 : i32
    scf.if %2 {
      %c0_8 = arith.constant 0 : index
      %c0_9 = arith.constant 0 : index
      %9 = vector.load %arg5[%c0_8, %c0_9] : memref<1x16xf32, #tpu.memory_space<vmem>>, vector<1x16xf32>
      %10 = vector.shape_cast %9 : vector<1x16xf32> to vector<1x16xf32>
      %11 = vector.broadcast %10 : vector<1x16xf32> to vector<8x16xf32>
      %c0_10 = arith.constant 0 : index
      %c0_11 = arith.constant 0 : index
      %12 = vector.load %arg6[%c0_10, %c0_11] : memref<8x16xf32, #tpu.memory_space<vmem>>, vector<8x16xf32>
      tpu.vector_store %arg6[%c0_10, %c0_11], %11 {strides = array<i32>} : memref<8x16xf32, #tpu.memory_space<vmem>>, vector<8x16xf32>,
    } else {
    }
    %c0 = arith.constant 0 : index
    %c0_1 = arith.constant 0 : index
    %3 = vector.load %arg6[%c0, %c0_1] : memref<8x16xf32, #tpu.memory_space<vmem>>, vector<8x16xf32>
    %c0_2 = arith.constant 0 : index
    %c0_3 = arith.constant 0 : index
    %4 = vector.load %arg3[%c0_2, %c0_3] : memref<8x32xf32, #tpu.memory_space<vmem>>, vector<8x32xf32>
    %c0_4 = arith.constant 0 : index
    %c0_5 = arith.constant 0 : index
    %5 = vector.load %arg4[%c0_4, %c0_5] : memref<16x32xf32, #tpu.memory_space<vmem>>, vector<16x32xf32>
    %cst = arith.constant dense<0.000000e+00> : vector<8x16xf32>
    %6 = tpu.matmul %4, %5, %cst {dimension_numbers = #tpu.dot_dimension_numbers<[1], [1], [0], [0], [0, 0, 1, 0], [], []>} : vector<8x32xf32>, vector<16x32xf32>, vector<8x16xf32> -> vector<8x16xf32>
    %7 = arith.addf %3, %6 : vector<8x16xf32>
    %c0_6 = arith.constant 0 : index
    %c0_7 = arith.constant 0 : index
    %8 = vector.load %arg6[%c0_6, %c0_7] : memref<8x16xf32, #tpu.memory_space<vmem>>, vector<8x16xf32>
    tpu.vector_store %arg6[%c0_6, %c0_7], %7 {strides = array<i32>} : memref<8x16xf32, #tpu.memory_space<vmem>>, vector<8x16xf32>,
    return
  }
  func.func @transform_0(%arg0: i32, %arg1: i32, %arg2: i32) -> (i32, i32) {
    %c0_i32 = arith.constant 0 : i32
    return %arg0, %arg2 : i32, i32
  }
  func.func @transform_1(%arg0: i32, %arg1: i32, %arg2: i32) -> (i32, i32) {
    %c0_i32 = arith.constant 0 : i32
    return %arg1, %arg2 : i32, i32
  }
  func.func @transform_2(%arg0: i32, %arg1: i32, %arg2: i32) -> (i32, i32) {
    %c0_i32 = arith.constant 0 : i32
    %c0_i32_0 = arith.constant 0 : i32
    return %c0_i32, %arg1 : i32, i32
  }
  func.func @transform_3(%arg0: i32, %arg1: i32, %arg2: i32) -> (i32, i32) {
    %c0_i32 = arith.constant 0 : i32
    return %arg0, %arg1 : i32, i32
  }
}

</mosaic_0001>

<bundles_post_ra>
// kernel: linear.1
= control target key start
LH: loop header
LB: loop body
LE: loop exit
PB: predicated region body
PF: predicated region fallthrough
CT: control target
= control target key end

     0   :  { %8 = vsyncpa [#allocation3], 0  ;;  %s236_s0 = inlined_call_operand.hbm [shape: f32[8,32], index: 0, kind: input, shape index: {}]   ;;  %s237_s1 = inlined_call_operand.hbm [shape: f32[16,32], index: 1, kind: input, shape index: {}]   ;;  %s238_s2 = inlined_call_operand.vmem [shape: f32[1,16], index: 2, kind: input, shape index: {}]   ;;  %s239_s3 = inlined_call_operand.hbm [shape: f32[8,16], index: 3, kind: output, shape index: {}]  }
   0x1   :  { %9 = vsyncpa [#allocation6], 0 }
   0x2   :  { %10 = vsyncpa [#allocation4], 0  ;;  %s16_s14 = sshll.u32 %s236_s0, 4  ;;  %s197_s15 = smov [#allocation2]   ;;  %s17_s14 = int_to_ptr.hbm [resolvable:$true] %s16_s14 }
   0x3   :  { %s18_s16 = sshll.u32 %s197_s15, 4  ;;  %s26_s19 = sshll.u32 %s237_s1, 4  ;;  %s19_s16 = int_to_ptr.vmem [resolvable:$true] %s18_s16  ;;  %s27_s19 = int_to_ptr.hbm [resolvable:$true] %s26_s19 }
   0x4   :  { %21 = dma.hbm_to_vmem [thread:$0]  %s17_s14, 128, %s19_s16, [#allocation3]  }
   0x5   :  { %s198_s20 = smov [#allocation5]   ;;  %s199_s22 = smov 128  }
   0x6   :  { %s28_s21 = sshll.u32 %s198_s20, 4  ;;  %s200_s23 = smov 8   ;;  %s29_s21 = int_to_ptr.vmem [resolvable:$true] %s28_s21 }
   0x7   :  { %34 = dma.hbm_to_vmem [thread:$0]  %s27_s19, 256, %s29_s21, [#allocation6], %s199_s22, %s199_s22, %s200_s23  }
   0x8   :  { %191 = dma.done.wait [#allocation3], 128  }
   0x9   :  { %192 = vsyncadd [#allocation3], 4294967168 }
   0xa   :  { %193 = dma.done.wait [#allocation6], 256  }
   0xb   :  { %194 = vsyncadd [#allocation6], 4294967040  ;;  %vm59_vm0 = vcmask 261120   ;;  %vm53_vm1 = vcmask 130048   ;;  %v118_v0 = vld [vmem:[%s238_s2] ss:$0 sm:$0xff] }
   0xc   :  { %v58_v1 = vld [vmem:[#allocation5 + $0x8] sm:$0xff]  ;;  %54 = vst.msk [vmem:[#allocation7] sm:$0xff] %vm53_vm1, %v118_v0  ;;  %v57_v2 = vld [vmem:[#allocation5] sm:$0xff]  ;;  %v56_v3 = vld [vmem:[#allocation2] sm:$0xff]  ;;  %s201_s1 = smov [#allocation7]   ;;  %s99_s28 = sshll.u32 %s239_s3, 4  ;;  %s100_s28 = int_to_ptr.hbm [resolvable:$true] %s99_s28 }
   0xd   :  { %110 = vmatpush.xpose.msk.msra.mxu0 %vm59_vm0, %v58_v1  ;;  %s97_s25 = sshll.u32 %s201_s1, 4  ;;  %s98_s25 = int_to_ptr.vmem [resolvable:$true] %s97_s25 }
  0x11   :  { %111 = vmatpush.xpose.msk.msra.mxu0 %vm59_vm0, %v57_v2 }
  0x13   :  { %v55_v4 = vld [vmem:[#allocation7] sm:$0xff] }
  0x14   :  { %112 = vmatmul.msk.f32.vlgmr.msra.gmra.mxu0 %vm59_vm0, %v56_v3 }
  0x91   :  { %v86_v5 = vpop.f32.mrf.mxu0 }
  0x92   :  { %v89_v6 = vadd.f32 %v86_v5, %v55_v4 }
  0x94   :  { %91 = vst.msk [vmem:[#allocation7] sm:$0xff] %vm53_vm1, %v89_v6 }
  0x95   :  { %102 = dma.vmem_to_hbm [thread:$0]  %s98_s25, 128, %s100_s28, [#allocation4]  }
  0x96   :  { %195 = dma.done.wait [#allocation4], 128  }
  0x97   :  { %196 = vsyncadd [#allocation4], 4294967168 }
  0x98   :  { %107 = vsyncpa [#allocation3], 1 }
  0x99   :  { %108 = vsyncpa [#allocation6], 1 }
  0x9a   :  { %109 = vsyncpa [#allocation4], 1 }

</bundles_post_ra>
